<compile_context>
chip_gen: v6e
topology: v6e:2x2x1
jax: 0.10.0
libtpu: 0.0.40
codegen_flags: <defaults>
</compile_context>

<pallas_src>
import functools

import jax
import jax.numpy as jnp
from jax.experimental import pallas as pl
from jax.experimental.pallas import tpu as pltpu

_LANE = 128     # TPU lane width: last dims padded to this
_SUBLANE = 8    # f32 sublane granule: row tiles padded to this


def _round_up(x, m):
    return (x + m - 1) // m * m


def predictor_kernel(nf_ref, se_ref, w1n_ref, w1s_ref, b1_ref, w2_ref, b2_ref, o_ref):
    """One row tile of fc2(relu(fc1(concat([node_feat, seed_emb], axis=1))))."""
    # fc1 over the virtual concat: two MXU matmuls, weights already (in, out).
    h = jnp.dot(nf_ref[...], w1n_ref[...], preferred_element_type=jnp.float32)
    h = h + jnp.dot(se_ref[...], w1s_ref[...], preferred_element_type=jnp.float32)
    h = h + b1_ref[...]
    h = jnp.maximum(h, 0.0)                    # ReLU on the f32 accumulator (VPU)
    # Dropout == identity in eval mode.
    h = h.astype(w2_ref.dtype)                 # keep bf16 MXU fast path if weights are bf16
    o = jnp.dot(h, w2_ref[...], preferred_element_type=jnp.float32) + b2_ref[...]
    o_ref[...] = o.astype(o_ref.dtype)


@functools.partial(jax.jit, static_argnames=("block_rows",))
def seedgat_predictor(node_feat, seed_emb, w1, b1, w2, b2, *, block_rows=None):
    """Eval-mode forward of SeedGAT's predictor head.

    node_feat : (N, node_dim)  output of the GAT stack (hidden_dim * num_heads wide)
    seed_emb  : (N, seed_dim)  seed embeddings (use_seed_emb=True path)
    w1, b1    : nn.Linear(node_dim + seed_dim -> hidden)   torch layout (out, in)
    w2, b2    : nn.Linear(hidden -> out_dim)               torch layout (out, in)
    """
    n, node_dim = node_feat.shape
    n2, seed_dim = seed_emb.shape
    hidden, fin = w1.shape
    out_dim, hidden2 = w2.shape
    assert n2 == n and fin == node_dim + seed_dim and hidden2 == hidden

    # ---- one-time host/XLA-side layout work (outside the kernel) ------------
    # Split fc1 along its input dim (fuses the torch.cat) and pre-transpose to
    # (in_features, out_features) so the kernel RHS is lane-dense.
    w1n = jnp.transpose(w1[:, :node_dim])        # (node_dim, hidden)
    w1s = jnp.transpose(w1[:, node_dim:])        # (seed_dim, hidden)
    w2t = jnp.transpose(w2)                      # (hidden, out_dim)

    # Zero-pad feature dims to lane multiples.  Exact: zero input cols hit zero
    # weight rows; padded hidden cols stay 0 through bias (=0) and ReLU.
    nd_p = _round_up(node_dim, _LANE)
    sd_p = _round_up(seed_dim, _LANE)
    hid_p = _round_up(hidden, _LANE)
    out_p = _round_up(out_dim, _LANE)

    # Row tile: multiple of 8, never "all rows in one shot"; aim for >=2 grid
    # steps so the pipeline overlaps DMA with compute and the parallel row axis
    # can shard across v7x's two TensorCores.
    if block_rows is None:
        block_rows = min(1024, _round_up(max(pl.cdiv(n, 2), _SUBLANE), _SUBLANE))
    block_rows = max(_SUBLANE, _round_up(min(block_rows, _round_up(n, _SUBLANE)), _SUBLANE))
    n_p = _round_up(n, block_rows)
    grid = (n_p // block_rows,)

    nf_p = jnp.pad(node_feat, ((0, n_p - n), (0, nd_p - node_dim)))
    se_p = jnp.pad(seed_emb, ((0, n_p - n), (0, sd_p - seed_dim)))
    w1n_p = jnp.pad(w1n, ((0, nd_p - node_dim), (0, hid_p - hidden)))
    w1s_p = jnp.pad(w1s, ((0, sd_p - seed_dim), (0, hid_p - hidden)))
    b1_p = jnp.pad(b1.reshape(1, -1), ((0, 0), (0, hid_p - hidden)))
    w2_p = jnp.pad(w2t, ((0, hid_p - hidden), (0, out_p - out_dim)))
    b2_p = jnp.pad(b2.reshape(1, -1), ((0, 0), (0, out_p - out_dim)))

    # ---- VMEM budget + cost estimate ----------------------------------------
    x_itm = node_feat.dtype.itemsize
    w_itm = w1.dtype.itemsize
    weight_bytes = (nd_p * hid_p + sd_p * hid_p + hid_p + hid_p * out_p + out_p) * w_itm
    est = (2 * block_rows * (nd_p + sd_p) * x_itm      # double-buffered input tiles
           + 2 * block_rows * out_p * x_itm            # double-buffered output tile
           + 2 * weight_bytes                          # weights/biases (default 2 bufs)
           + block_rows * hid_p * 4)                   # f32 hidden intermediate
    vmem_limit = int(min(64 * 1024 * 1024, max(32 * 1024 * 1024, 2 * est)))

    flops = 2 * n_p * (nd_p + sd_p) * hid_p + 2 * n_p * hid_p * out_p
    bytes_accessed = int((nf_p.size + se_p.size + n_p * out_p) * x_itm + weight_bytes)
    cost = pl.CostEstimate(flops=int(flops), transcendentals=0,
                           bytes_accessed=bytes_accessed)

    out_padded = pl.pallas_call(
        predictor_kernel,
        out_shape=jax.ShapeDtypeStruct((n_p, out_p), node_feat.dtype),
        grid_spec=pltpu.PrefetchScalarGridSpec(
            num_scalar_prefetch=0,
            grid=grid,
            in_specs=[
                pl.BlockSpec((block_rows, nd_p), lambda i: (i, 0)),   # node_feat rows
                pl.BlockSpec((block_rows, sd_p), lambda i: (i, 0)),   # seed_emb rows
                pl.BlockSpec((nd_p, hid_p), lambda i: (0, 0)),        # W1 (node part), (in,out)
                pl.BlockSpec((sd_p, hid_p), lambda i: (0, 0)),        # W1 (seed part), (in,out)
                pl.BlockSpec((1, hid_p), lambda i: (0, 0)),           # b1
                pl.BlockSpec((hid_p, out_p), lambda i: (0, 0)),       # W2, (in,out)
                pl.BlockSpec((1, out_p), lambda i: (0, 0)),           # b2
            ],
            out_specs=pl.BlockSpec((block_rows, out_p), lambda i: (i, 0)),
        ),
        compiler_params=pltpu.CompilerParams(
            dimension_semantics=("parallel",),
            vmem_limit_bytes=vmem_limit,
        ),
        cost_estimate=cost,
    )(nf_p, se_p, w1n_p, w1s_p, b1_p, w2_p, b2_p)

    # Slice the padding off outside the kernel (keeps the kernel stores lane-dense).
    return out_padded[:n, :out_dim]


def init_linear(key, out_features, in_features, dtype=jnp.float32):
    # Matches torch.nn.Linear.reset_parameters(): U(-1/sqrt(fan_in), 1/sqrt(fan_in)).
    kw, kb = jax.random.split(key)
    bound = 1.0 / jnp.sqrt(jnp.float32(in_features))
    w = jax.random.uniform(kw, (out_features, in_features), dtype, -bound, bound)
    b = jax.random.uniform(kb, (out_features,), dtype, -bound, bound)
    return w, b


def reference_forward(node_feat, seed_emb, w1, b1, w2, b2):
    x = jnp.concatenate([node_feat, seed_emb], axis=1)
    h = jnp.maximum(
        jnp.dot(x, w1.T, precision=jax.lax.Precision.HIGHEST) + b1, 0.0)
    return jnp.dot(h, w2.T, precision=jax.lax.Precision.HIGHEST) + b2


if __name__ == "__main__":
    key = jax.random.PRNGKey(0)
    k_nf, k_se, k1, k2 = jax.random.split(key, 4)

    # Small shapes consistent with SeedGAT: hidden_dim=32, num_heads=4 -> GAT
    # output width 128; seed_dim=16; out_dim=4; N graph nodes.
    N = 512
    HIDDEN_DIM, NUM_HEADS, SEED_DIM, OUT_DIM = 32, 4, 16, 4
    NODE_DIM = HIDDEN_DIM * NUM_HEADS            # hidden_dim * num_heads
    FINAL_IN = NODE_DIM + SEED_DIM               # predictor input after torch.cat

    node_feat = jax.random.normal(k_nf, (N, NODE_DIM), jnp.float32)
    seed_emb = jax.random.normal(k_se, (N, SEED_DIM), jnp.float32)
    w1, b1 = init_linear(k1, HIDDEN_DIM, FINAL_IN)
    w2, b2 = init_linear(k2, OUT_DIM, HIDDEN_DIM)

    out = seedgat_predictor(node_feat, seed_emb, w1, b1, w2, b2)
    out = jax.block_until_ready(out)

    ref = reference_forward(node_feat, seed_emb, w1, b1, w2, b2)
    assert out.shape == (N, OUT_DIM)
    assert jnp.allclose(out, ref, atol=1e-3, rtol=1e-3), "mismatch vs pure-JAX reference"

    print("KERNEL_OK")
</pallas_src>

<mosaic_0001>
module attributes {stable_mosaic.version = 11 : i64} {
  func.func @predictor_kernel(%arg0: i32, %arg1: memref<256x128xf32, #tpu.memory_space<vmem>>, %arg2: memref<256x128xf32, #tpu.memory_space<vmem>>, %arg3: memref<128x128xf32, #tpu.memory_space<vmem>>, %arg4: memref<128x128xf32, #tpu.memory_space<vmem>>, %arg5: memref<1x128xf32, #tpu.memory_space<vmem>>, %arg6: memref<128x128xf32, #tpu.memory_space<vmem>>, %arg7: memref<1x128xf32, #tpu.memory_space<vmem>>, %arg8: memref<256x128xf32, #tpu.memory_space<vmem>>) attributes {dimension_semantics = [#tpu.dimension_semantics<parallel>], iteration_bounds = array<i64: 2>, scalar_prefetch = 0 : i64, scratch_operands = 0 : i64, tpu.core_type = #tpu.core_type<tc>, window_params = [{transform_indices = @transform_0, window_bounds = array<i64: 256, 128>}, {transform_indices = @transform_1, window_bounds = array<i64: 256, 128>}, {pipeline_mode = #tpu.pipeline_mode<synchronous>, transform_indices = @transform_2, window_bounds = array<i64: 128, 128>}, {pipeline_mode = #tpu.pipeline_mode<synchronous>, transform_indices = @transform_3, window_bounds = array<i64: 128, 128>}, {pipeline_mode = #tpu.pipeline_mode<synchronous>, transform_indices = @transform_4, window_bounds = array<i64: 1, 128>}, {pipeline_mode = #tpu.pipeline_mode<synchronous>, transform_indices = @transform_5, window_bounds = array<i64: 128, 128>}, {pipeline_mode = #tpu.pipeline_mode<synchronous>, transform_indices = @transform_6, window_bounds = array<i64: 1, 128>}, {transform_indices = @transform_7, window_bounds = array<i64: 256, 128>}]} {
    %c0 = arith.constant 0 : index
    %c0_0 = arith.constant 0 : index
    %0 = vector.load %arg1[%c0, %c0_0] : memref<256x128xf32, #tpu.memory_space<vmem>>, vector<256x128xf32>
    %c0_1 = arith.constant 0 : index
    %c0_2 = arith.constant 0 : index
    %1 = vector.load %arg3[%c0_1, %c0_2] : memref<128x128xf32, #tpu.memory_space<vmem>>, vector<128x128xf32>
    %cst = arith.constant dense<0.000000e+00> : vector<256x128xf32>
    %2 = tpu.matmul %0, %1, %cst {dimension_numbers = #tpu.dot_dimension_numbers<[1], [0], [0], [1], [0, 0, 1, 1], [], []>} : vector<256x128xf32>, vector<128x128xf32>, vector<256x128xf32> -> vector<256x128xf32>
    %c0_3 = arith.constant 0 : index
    %c0_4 = arith.constant 0 : index
    %3 = vector.load %arg2[%c0_3, %c0_4] : memref<256x128xf32, #tpu.memory_space<vmem>>, vector<256x128xf32>
    %c0_5 = arith.constant 0 : index
    %c0_6 = arith.constant 0 : index
    %4 = vector.load %arg4[%c0_5, %c0_6] : memref<128x128xf32, #tpu.memory_space<vmem>>, vector<128x128xf32>
    %cst_7 = arith.constant dense<0.000000e+00> : vector<256x128xf32>
    %5 = tpu.matmul %3, %4, %cst_7 {dimension_numbers = #tpu.dot_dimension_numbers<[1], [0], [0], [1], [0, 0, 1, 1], [], []>} : vector<256x128xf32>, vector<128x128xf32>, vector<256x128xf32> -> vector<256x128xf32>
    %6 = arith.addf %2, %5 : vector<256x128xf32>
    %c0_8 = arith.constant 0 : index
    %c0_9 = arith.constant 0 : index
    %7 = vector.load %arg5[%c0_8, %c0_9] : memref<1x128xf32, #tpu.memory_space<vmem>>, vector<1x128xf32>
    %8 = vector.broadcast %7 : vector<1x128xf32> to vector<256x128xf32>
    %9 = arith.addf %6, %8 : vector<256x128xf32>
    %cst_10 = arith.constant 0.000000e+00 : f32
    %10 = vector.broadcast %cst_10 : f32 to vector<256x128xf32>
    %11 = arith.maximumf %9, %10 : vector<256x128xf32>
    %c0_11 = arith.constant 0 : index
    %c0_12 = arith.constant 0 : index
    %12 = vector.load %arg6[%c0_11, %c0_12] : memref<128x128xf32, #tpu.memory_space<vmem>>, vector<128x128xf32>
    %cst_13 = arith.constant dense<0.000000e+00> : vector<256x128xf32>
    %13 = tpu.matmul %11, %12, %cst_13 {dimension_numbers = #tpu.dot_dimension_numbers<[1], [0], [0], [1], [0, 0, 1, 1], [], []>} : vector<256x128xf32>, vector<128x128xf32>, vector<256x128xf32> -> vector<256x128xf32>
    %c0_14 = arith.constant 0 : index
    %c0_15 = arith.constant 0 : index
    %14 = vector.load %arg7[%c0_14, %c0_15] : memref<1x128xf32, #tpu.memory_space<vmem>>, vector<1x128xf32>
    %15 = vector.broadcast %14 : vector<1x128xf32> to vector<256x128xf32>
    %16 = arith.addf %13, %15 : vector<256x128xf32>
    %c0_16 = arith.constant 0 : index
    %c0_17 = arith.constant 0 : index
    %17 = vector.load %arg8[%c0_16, %c0_17] : memref<256x128xf32, #tpu.memory_space<vmem>>, vector<256x128xf32>
    tpu.vector_store %arg8[%c0_16, %c0_17], %16 {strides = array<i32>} : memref<256x128xf32, #tpu.memory_space<vmem>>, vector<256x128xf32>,
    return
  }
  func.func @transform_0(%arg0: i32) -> (i32, i32) {
    %c0_i32 = arith.constant 0 : i32
    %c0_i32_0 = arith.constant 0 : i32
    return %arg0, %c0_i32 : i32, i32
  }
  func.func @transform_1(%arg0: i32) -> (i32, i32) {
    %c0_i32 = arith.constant 0 : i32
    %c0_i32_0 = arith.constant 0 : i32
    return %arg0, %c0_i32 : i32, i32
  }
  func.func @transform_2(%arg0: i32) -> (i32, i32) {
    %c0_i32 = arith.constant 0 : i32
    %c0_i32_0 = arith.constant 0 : i32
    %c0_i32_1 = arith.constant 0 : i32
    return %c0_i32, %c0_i32_0 : i32, i32
  }
  func.func @transform_3(%arg0: i32) -> (i32, i32) {
    %c0_i32 = arith.constant 0 : i32
    %c0_i32_0 = arith.constant 0 : i32
    %c0_i32_1 = arith.constant 0 : i32
    return %c0_i32, %c0_i32_0 : i32, i32
  }
  func.func @transform_4(%arg0: i32) -> (i32, i32) {
    %c0_i32 = arith.constant 0 : i32
    %c0_i32_0 = arith.constant 0 : i32
    %c0_i32_1 = arith.constant 0 : i32
    return %c0_i32, %c0_i32_0 : i32, i32
  }
  func.func @transform_5(%arg0: i32) -> (i32, i32) {
    %c0_i32 = arith.constant 0 : i32
    %c0_i32_0 = arith.constant 0 : i32
    %c0_i32_1 = arith.constant 0 : i32
    return %c0_i32, %c0_i32_0 : i32, i32
  }
  func.func @transform_6(%arg0: i32) -> (i32, i32) {
    %c0_i32 = arith.constant 0 : i32
    %c0_i32_0 = arith.constant 0 : i32
    %c0_i32_1 = arith.constant 0 : i32
    return %c0_i32, %c0_i32_0 : i32, i32
  }
  func.func @transform_7(%arg0: i32) -> (i32, i32) {
    %c0_i32 = arith.constant 0 : i32
    %c0_i32_0 = arith.constant 0 : i32
    return %arg0, %c0_i32 : i32, i32
  }
}

</mosaic_0001>

<bundles_post_ra>
// kernel: seedgat_predictor.1
= control target key start
LH: loop header
LB: loop body
LE: loop exit
PB: predicated region body
PF: predicated region fallthrough
CT: control target
= control target key end

     0   :  { %s1756_s24 = smov 0   ;;  %s2149_s0 = inlined_call_operand.vmem [shape: f32[512,128], index: 0, kind: input, shape index: {}]   ;;  %s2150_s1 = inlined_call_operand.vmem [shape: f32[512,128], index: 1, kind: input, shape index: {}]   ;;  %s2151_s2 = inlined_call_operand.vmem [shape: f32[128,128], index: 2, kind: input, shape index: {}]   ;;  %s2152_s3 = inlined_call_operand.vmem [shape: f32[128,128], index: 3, kind: input, shape index: {}]   ;;  %s2153_s4 = inlined_call_operand.vmem [shape: f32[1,128], index: 4, kind: input, shape index: {}]   ;;  %s2154_s5 = inlined_call_operand.vmem [shape: f32[128,128], index: 5, kind: input, shape index: {}]   ;;  %s2155_s6 = inlined_call_operand.vmem [shape: f32[1,128], index: 6, kind: input, shape index: {}]   ;;  %s2156_s7 = inlined_call_operand.vmem [shape: f32[512,128], index: 7, kind: output, shape index: {}]  }
   0x1 LB: > { %s1269_s25 = sadd.s32 4294967295, %s1714_s24   ;;  %p1273_p0 = scmp.ge.s32.totalorder %s1714_s24, 1  ;;  %s1714_s24 = sphi %s1756_s24, %s17_s24  }
   0x2   : > { %p249_p1 = scmp.lt.s32.totalorder %s1714_s24, 3 }
   0x4   : > { %p250_p2 = pnand %p1273_p0, %p249_p1 }
   0x5   : > { %s1274_s30 = sshll.u32 (!%p250_p2), %s1269_s25, 5 }
   0x6   : > { %253 = sbr.rel (%p250_p2) target bundleno = 536 (0x218), region = 48  ;;  %p287_p3 = scmp.lt.s32.totalorder (!%p250_p2), %s1274_s30, 63 }
   0xb   : > { %v399_v0 = vld [vmem:[%s2152_s3 + $0x78] sm:$0xff]  ;;  %v398_v1 = vld [vmem:[%s2152_s3 + $0x70] sm:$0xff]  ;;  %v397_v2 = vld [vmem:[%s2152_s3 + $0x68] sm:$0xff]  ;;  %s2158_s30 = smov (!%p287_p3, %s1274_s30), 63 }
   0xc   : > { %1668 = vmatprep.subr.mxu1 %v399_v0  ;;  %1428 = vmatprep.subr.mxu0 %v399_v0  ;;  %v396_v3 = vld [vmem:[%s2152_s3 + $0x60] sm:$0xff]  ;;  %s1776_s12 = sshll.u32 %s2158_s30, 3  ;;  %v395_v4 = vld [vmem:[%s2152_s3 + $0x58] sm:$0xff]  ;;  %v394_v6 = vld [vmem:[%s2152_s3 + $0x50] sm:$0xff] }
   0xd   : > { %1684 = vmatpush3.msra.mxu1 %v399_v0  ;;  %1429 = vmatpush3.msra.mxu0 %v399_v0  ;;  %s1785_s17 = scalar_lea.vmem %s2150_s1, %s1776_s12  ;;  %v393_v7 = vld [vmem:[%s2152_s3 + $0x48] sm:$0xff]  ;;  %v392_v8 = vld [vmem:[%s2152_s3 + $0x40] sm:$0xff]  ;;  %v391_v9 = vld [vmem:[%s2152_s3 + $0x38] sm:$0xff]  ;;  %s1892_s8 = scalar_lea.vmem %s2149_s0, %s1776_s12 }
   0xe   : > { %1669 = vmatprep.subr.mxu1 %v398_v1  ;;  %1430 = vmatprep.subr.mxu0 %v398_v1  ;;  %v368_v5 = vld [vmem:[%s1785_s17 + $0x80] sm:$0xff]  ;;  %v390_v10 = vld [vmem:[%s2152_s3 + $0x30] sm:$0xff]  ;;  %v389_v11 = vld [vmem:[%s2152_s3 + $0x28] sm:$0xff]  ;;  %s2080_s10 = scalar_lea.vmem %s2156_s7, %s1776_s12 }
   0xf   : > { %1685 = vmatpush3.msra.mxu1 %v398_v1  ;;  %1431 = vmatpush3.msra.mxu0 %v398_v1  ;;  %v388_v12 = vld [vmem:[%s2152_s3 + $0x20] sm:$0xff]  ;;  %v387_v13 = vld [vmem:[%s2152_s3 + $0x18] sm:$0xff]  ;;  %v386_v14 = vld [vmem:[%s2152_s3 + $0x10] sm:$0xff] }
  0x10   : > { %1670 = vmatprep.subr.mxu1 %v397_v2  ;;  %1432 = vmatprep.subr.mxu0 %v397_v2  ;;  %v385_v15 = vld [vmem:[%s2152_s3 + $0x8] sm:$0xff]  ;;  %v384_v16 = vld [vmem:[%s2152_s3] sm:$0xff]  ;;  %v351_v18 = vld [vmem:[%s2151_s2 + $0x78] sm:$0xff] }
  0x11   : > { %1686 = vmatpush3.msra.mxu1 %v397_v2  ;;  %1433 = vmatpush3.msra.mxu0 %v397_v2  ;;  %v369_v17 = vld [vmem:[%s1785_s17 + $0x88] sm:$0xff]  ;;  %v370_v19 = vld [vmem:[%s1785_s17 + $0x90] sm:$0xff]  ;;  %v352_v21 = vld [vmem:[%s1785_s17] sm:$0xff] }
  0x12   : > { %1671 = vmatprep.subr.mxu1 %v396_v3  ;;  %1434 = vmatprep.subr.mxu0 %v396_v3  ;;  %v350_v20 = vld [vmem:[%s2151_s2 + $0x70] sm:$0xff]  ;;  %v371_v22 = vld [vmem:[%s1785_s17 + $0x98] sm:$0xff]  ;;  %v349_v23 = vld [vmem:[%s2151_s2 + $0x68] sm:$0xff] }
  0x13   : > { %1687 = vmatpush3.msra.mxu1 %v396_v3  ;;  %1484 = vmatprep.mubr.f32.mxu1 %v368_v5  ;;  %v372_v24 = vld [vmem:[%s1785_s17 + $0xa0] sm:$0xff]  ;;  %v353_v26 = vld [vmem:[%s1785_s17 + $0x8] sm:$0xff]  ;;  %v354_v27 = vld [vmem:[%s1785_s17 + $0x10] sm:$0xff] }
  0x14   : > { %1672 = vmatprep.subr.mxu1 %v395_v4  ;;  %1435 = vmatpush3.msra.mxu0 %v396_v3  ;;  %v348_v25 = vld [vmem:[%s2151_s2 + $0x60] sm:$0xff]  ;;  %v373_v28 = vld [vmem:[%s1785_s17 + $0xa8] sm:$0xff]  ;;  %v347_v29 = vld [vmem:[%s2151_s2 + $0x58] sm:$0xff] }
  0x15   : > { %1688 = vmatpush3.msra.mxu1 %v395_v4  ;;  %1436 = vmatprep.subr.mxu0 %v395_v4  ;;  %v374_v30 = vld [vmem:[%s1785_s17 + $0xb0] sm:$0xff]  ;;  %v355_v32 = vld [vmem:[%s1785_s17 + $0x18] sm:$0xff]  ;;  %v356_v33 = vld [vmem:[%s1785_s17 + $0x20] sm:$0xff] }
  0x16   : > { %1673 = vmatprep.subr.mxu1 %v394_v6  ;;  %1437 = vmatpush3.msra.mxu0 %v395_v4  ;;  %v346_v31 = vld [vmem:[%s2151_s2 + $0x50] sm:$0xff]  ;;  %v375_v34 = vld [vmem:[%s1785_s17 + $0xb8] sm:$0xff]  ;;  %v345_v35 = vld [vmem:[%s2151_s2 + $0x48] sm:$0xff] }
  0x17   : > { %1689 = vmatpush3.msra.mxu1 %v394_v6  ;;  %1438 = vmatprep.subr.mxu0 %v394_v6  ;;  %v376_v36 = vld [vmem:[%s1785_s17 + $0xc0] sm:$0xff]  ;;  %v357_v38 = vld [vmem:[%s1785_s17 + $0x28] sm:$0xff]  ;;  %v358_v39 = vld [vmem:[%s1785_s17 + $0x30] sm:$0xff] }
  0x18   : > { %1674 = vmatprep.subr.mxu1 %v393_v7  ;;  %1439 = vmatpush3.msra.mxu0 %v394_v6  ;;  %v344_v37 = vld [vmem:[%s2151_s2 + $0x40] sm:$0xff]  ;;  %v377_v40 = vld [vmem:[%s1785_s17 + $0xc8] sm:$0xff]  ;;  %v343_v41 = vld [vmem:[%s2151_s2 + $0x38] sm:$0xff] }
  0x19   : > { %1690 = vmatpush3.msra.mxu1 %v393_v7  ;;  %1440 = vmatprep.subr.mxu0 %v393_v7  ;;  %v378_v42 = vld [vmem:[%s1785_s17 + $0xd0] sm:$0xff]  ;;  %v359_v44 = vld [vmem:[%s1785_s17 + $0x38] sm:$0xff]  ;;  %v360_v45 = vld [vmem:[%s1785_s17 + $0x40] sm:$0xff] }
  0x1a   : > { %1675 = vmatprep.subr.mxu1 %v392_v8  ;;  %1441 = vmatpush3.msra.mxu0 %v393_v7  ;;  %v342_v43 = vld [vmem:[%s2151_s2 + $0x30] sm:$0xff]  ;;  %v379_v46 = vld [vmem:[%s1785_s17 + $0xd8] sm:$0xff]  ;;  %v341_v47 = vld [vmem:[%s2151_s2 + $0x28] sm:$0xff] }
  0x1b   : > { %1691 = vmatpush3.msra.mxu1 %v392_v8  ;;  %1442 = vmatprep.subr.mxu0 %v392_v8  ;;  %v380_v48 = vld [vmem:[%s1785_s17 + $0xe0] sm:$0xff]  ;;  %v361_v50 = vld [vmem:[%s1785_s17 + $0x48] sm:$0xff]  ;;  %v362_v51 = vld [vmem:[%s1785_s17 + $0x50] sm:$0xff] }
  0x1c   : > { %1676 = vmatprep.subr.mxu1 %v391_v9  ;;  %1443 = vmatpush3.msra.mxu0 %v392_v8  ;;  %v340_v49 = vld [vmem:[%s2151_s2 + $0x20] sm:$0xff]  ;;  %v381_v52 = vld [vmem:[%s1785_s17 + $0xe8] sm:$0xff]  ;;  %v339_v53 = vld [vmem:[%s2151_s2 + $0x18] sm:$0xff] }
  0x1d   : > { %1692 = vmatpush3.msra.mxu1 %v391_v9  ;;  %1444 = vmatprep.subr.mxu0 %v391_v9  ;;  %v382_v54 = vld [vmem:[%s1785_s17 + $0xf0] sm:$0xff]  ;;  %v363_v56 = vld [vmem:[%s1785_s17 + $0x58] sm:$0xff]  ;;  %v364_v57 = vld [vmem:[%s1785_s17 + $0x60] sm:$0xff] }
  0x1e   : > { %1677 = vmatprep.subr.mxu1 %v390_v10  ;;  %1445 = vmatpush3.msra.mxu0 %v391_v9  ;;  %v338_v55 = vld [vmem:[%s2151_s2 + $0x10] sm:$0xff]  ;;  %v383_v58 = vld [vmem:[%s1785_s17 + $0xf8] sm:$0xff]  ;;  %v337_v59 = vld [vmem:[%s2151_s2 + $0x8] sm:$0xff] }
  0x1f   : > { %1693 = vmatpush3.msra.mxu1 %v390_v10  ;;  %1446 = vmatprep.subr.mxu0 %v390_v10  ;;  %v304_v60 = vld [vmem:[%s1892_s8] sm:$0xff]  ;;  %v365_v62 = vld [vmem:[%s1785_s17 + $0x68] sm:$0xff]  ;;  %v366_v63 = vld [vmem:[%s1785_s17 + $0x70] sm:$0xff] }
  0x20   : > { %1678 = vmatprep.subr.mxu1 %v389_v11  ;;  %1447 = vmatpush3.msra.mxu0 %v390_v10  ;;  %v336_v61 = vld [vmem:[%s2151_s2] sm:$0xff]  ;;  %v305_v0 = vld [vmem:[%s1892_s8 + $0x8] sm:$0xff]  ;;  %v306_v1 = vld [vmem:[%s1892_s8 + $0x10] sm:$0xff] }
  0x21   : > { %1694 = vmatpush3.msra.mxu1 %v389_v11  ;;  %1448 = vmatprep.subr.mxu0 %v389_v11  ;;  %v367_v2 = vld [vmem:[%s1785_s17 + $0x78] sm:$0xff]  ;;  %v308_v4 = vld [vmem:[%s1892_s8 + $0x20] sm:$0xff]  ;;  %v309_v5 = vld [vmem:[%s1892_s8 + $0x28] sm:$0xff] }
  0x22   : > { %1679 = vmatprep.subr.mxu1 %v388_v12  ;;  %1449 = vmatpush3.msra.mxu0 %v389_v11  ;;  %v307_v3 = vld [vmem:[%s1892_s8 + $0x18] sm:$0xff]  ;;  %v310_v6 = vld [vmem:[%s1892_s8 + $0x30] sm:$0xff]  ;;  %v312_v8 = vld [vmem:[%s1892_s8 + $0x40] sm:$0xff] }
  0x23   : > { %1695 = vmatpush3.msra.mxu1 %v388_v12  ;;  %1450 = vmatprep.subr.mxu0 %v388_v12  ;;  %v311_v7 = vld [vmem:[%s1892_s8 + $0x38] sm:$0xff]  ;;  %v313_v9 = vld [vmem:[%s1892_s8 + $0x48] sm:$0xff]  ;;  %v314_v10 = vld [vmem:[%s1892_s8 + $0x50] sm:$0xff] }
  0x24   : > { %1680 = vmatprep.subr.mxu1 %v387_v13  ;;  %1451 = vmatpush3.msra.mxu0 %v388_v12  ;;  %v315_v11 = vld [vmem:[%s1892_s8 + $0x58] sm:$0xff]  ;;  %v316_v12 = vld [vmem:[%s1892_s8 + $0x60] sm:$0xff] }
  0x25   : > { %1696 = vmatpush3.msra.mxu1 %v387_v13  ;;  %1452 = vmatprep.subr.mxu0 %v387_v13 }
  0x26   : > { %1681 = vmatprep.subr.mxu1 %v386_v14  ;;  %1453 = vmatpush3.msra.mxu0 %v387_v13  ;;  %v317_v13 = vld [vmem:[%s1892_s8 + $0x68] sm:$0xff] }
  0x27   : > { %1697 = vmatpush3.msra.mxu1 %v386_v14  ;;  %1454 = vmatprep.subr.mxu0 %v386_v14 }
  0x28   : > { %1682 = vmatprep.subr.mxu1 %v385_v15  ;;  %1455 = vmatpush3.msra.mxu0 %v386_v14  ;;  %v318_v14 = vld [vmem:[%s1892_s8 + $0x70] sm:$0xff] }
  0x29   : > { %1698 = vmatpush3.msra.mxu1 %v385_v15  ;;  %1456 = vmatprep.subr.mxu0 %v385_v15 }
  0x2a   : > { %1683 = vmatprep.subr.mxu1 %v384_v16  ;;  %1457 = vmatpush3.msra.mxu0 %v385_v15  ;;  %v319_v15 = vld [vmem:[%s1892_s8 + $0x78] sm:$0xff] }
  0x2b   : > { %1699 = vmatpush3.msra.mxu1 %v384_v16  ;;  %1458 = vmatprep.subr.mxu0 %v384_v16 }
  0x2c   : > { %1485 = vmatmul.mubr.f32.vlgmr.msra.gmra.mxu1 %v369_v17  ;;  %1508 = vmatprep.subr.mxu1 %v351_v18  ;;  %v321_v17 = vld [vmem:[%s1892_s8 + $0x88] sm:$0xff] }
  0x2d   : > { %1509 = vmatpush3.msra.mxu1 %v351_v18  ;;  %1487 = vmatprep.mubr.f32.mxu1 %v370_v19  ;;  %v322_v18 = vld [vmem:[%s1892_s8 + $0x90] sm:$0xff]  ;;  %v323_v19 = vld [vmem:[%s1892_s8 + $0x98] sm:$0xff] }
  0x2e   : > { %1510 = vmatprep.subr.mxu1 %v350_v20  ;;  %1459 = vmatpush3.msra.mxu0 %v384_v16  ;;  %v320_v16 = vld [vmem:[%s1892_s8 + $0x80] sm:$0xff] }
  0x2f   : > { %1511 = vmatpush3.msra.mxu1 %v350_v20  ;;  %1460 = vmatprep.mubr.f32.mxu0 %v352_v21  ;;  %v324_v20 = vld [vmem:[%s1892_s8 + $0xa0] sm:$0xff]  ;;  %v325_v21 = vld [vmem:[%s1892_s8 + $0xa8] sm:$0xff] }
  0x30   : > { %1488 = vmatmul.mubr.f32.gmra.mxu1 %v371_v22  ;;  %1512 = vmatprep.subr.mxu1 %v349_v23  ;;  %v326_v22 = vld [vmem:[%s1892_s8 + $0xb0] sm:$0xff] }
  0x31   : > { %1513 = vmatpush3.msra.mxu1 %v349_v23  ;;  %1490 = vmatprep.mubr.f32.mxu1 %v372_v24  ;;  %v327_v23 = vld [vmem:[%s1892_s8 + $0xb8] sm:$0xff] }
  0x32   : > { %1514 = vmatprep.subr.mxu1 %v348_v25  ;;  %1461 = vmatmul.mubr.f32.vlgmr.msra.gmra.mxu0 %v353_v26  ;;  %v936_v24 = vld [vmem:[%s2154_s5 + $0x78] sm:$0xff]  ;;  %v935_v26 = vld [vmem:[%s2154_s5 + $0x70] sm:$0xff] }
  0x33   : > { %1515 = vmatpush3.msra.mxu1 %v348_v25  ;;  %1463 = vmatprep.mubr.f32.mxu0 %v354_v27  ;;  %v328_v25 = vld [vmem:[%s1892_s8 + $0xc0] sm:$0xff]  ;;  %v329_v27 = vld [vmem:[%s1892_s8 + $0xc8] sm:$0xff] }
  0x34   : > { %1491 = vmatmul.mubr.f32.gmra.mxu1 %v373_v28  ;;  %1516 = vmatprep.subr.mxu1 %v347_v29  ;;  %v934_v28 = vld [vmem:[%s2154_s5 + $0x68] sm:$0xff] }
  0x35   : > { %1517 = vmatpush3.msra.mxu1 %v347_v29  ;;  %1493 = vmatprep.mubr.f32.mxu1 %v374_v30  ;;  %v330_v29 = vld [vmem:[%s1892_s8 + $0xd0] sm:$0xff]  ;;  %v933_v30 = vld [vmem:[%s2154_s5 + $0x60] sm:$0xff] }
  0x36   : > { %1518 = vmatprep.subr.mxu1 %v346_v31  ;;  %1464 = vmatmul.mubr.f32.gmra.mxu0 %v355_v32  ;;  %v932_v32 = vld [vmem:[%s2154_s5 + $0x58] sm:$0xff] }
  0x37   : > { %1519 = vmatpush3.msra.mxu1 %v346_v31  ;;  %1466 = vmatprep.mubr.f32.mxu0 %v356_v33  ;;  %v331_v31 = vld [vmem:[%s1892_s8 + $0xd8] sm:$0xff]  ;;  %v332_v33 = vld [vmem:[%s1892_s8 + $0xe0] sm:$0xff] }
  0x38   : > { %1494 = vmatmul.mubr.f32.gmra.mxu1 %v375_v34  ;;  %1520 = vmatprep.subr.mxu1 %v345_v35  ;;  %v931_v34 = vld [vmem:[%s2154_s5 + $0x50] sm:$0xff] }
  0x39   : > { %1521 = vmatpush3.msra.mxu1 %v345_v35  ;;  %1496 = vmatprep.mubr.f32.mxu1 %v376_v36  ;;  %v333_v35 = vld [vmem:[%s1892_s8 + $0xe8] sm:$0xff] }
  0x3a   : > { %1522 = vmatprep.subr.mxu1 %v344_v37  ;;  %1467 = vmatmul.mubr.f32.gmra.mxu0 %v357_v38  ;;  %v930_v36 = vld [vmem:[%s2154_s5 + $0x48] sm:$0xff]  ;;  %v929_v38 = vld [vmem:[%s2154_s5 + $0x40] sm:$0xff] }
  0x3b   : > { %1523 = vmatpush3.msra.mxu1 %v344_v37  ;;  %1469 = vmatprep.mubr.f32.mxu0 %v358_v39  ;;  %v334_v37 = vld [vmem:[%s1892_s8 + $0xf0] sm:$0xff]  ;;  %v335_v39 = vld [vmem:[%s1892_s8 + $0xf8] sm:$0xff] }
  0x3c   : > { %1497 = vmatmul.mubr.f32.gmra.mxu1 %v377_v40  ;;  %1524 = vmatprep.subr.mxu1 %v343_v41  ;;  %v928_v40 = vld [vmem:[%s2154_s5 + $0x38] sm:$0xff] }
  0x3d   : > { %1525 = vmatpush3.msra.mxu1 %v343_v41  ;;  %1499 = vmatprep.mubr.f32.mxu1 %v378_v42  ;;  %v927_v41 = vld [vmem:[%s2154_s5 + $0x30] sm:$0xff]  ;;  %v926_v42 = vld [vmem:[%s2154_s5 + $0x28] sm:$0xff] }
  0x3e   : > { %1526 = vmatprep.subr.mxu1 %v342_v43  ;;  %1470 = vmatmul.mubr.f32.gmra.mxu0 %v359_v44  ;;  %v924_v44 = vld [vmem:[%s2154_s5 + $0x18] sm:$0xff] }
  0x3f   : > { %1527 = vmatpush3.msra.mxu1 %v342_v43  ;;  %1472 = vmatprep.mubr.f32.mxu0 %v360_v45  ;;  %v925_v43 = vld [vmem:[%s2154_s5 + $0x20] sm:$0xff]  ;;  %v923_v45 = vld [vmem:[%s2154_s5 + $0x10] sm:$0xff] }
  0x40   : > { %1500 = vmatmul.mubr.f32.gmra.mxu1 %v379_v46  ;;  %1528 = vmatprep.subr.mxu1 %v341_v47  ;;  %v922_v46 = vld [vmem:[%s2154_s5 + $0x8] sm:$0xff] }
  0x41   : > { %1529 = vmatpush3.msra.mxu1 %v341_v47  ;;  %1502 = vmatprep.mubr.f32.mxu1 %v380_v48  ;;  %v921_v47 = vld [vmem:[%s2154_s5] sm:$0xff] }
  0x42   : > { %1530 = vmatprep.subr.mxu1 %v340_v49  ;;  %1473 = vmatmul.mubr.f32.gmra.mxu0 %v361_v50 }
  0x43   : > { %1531 = vmatpush3.msra.mxu1 %v340_v49  ;;  %1475 = vmatprep.mubr.f32.mxu0 %v362_v51 }
  0x44   : > { %1503 = vmatmul.mubr.f32.gmra.mxu1 %v381_v52  ;;  %1532 = vmatprep.subr.mxu1 %v339_v53 }
  0x45   : > { %1533 = vmatpush3.msra.mxu1 %v339_v53  ;;  %1505 = vmatprep.mubr.f32.mxu1 %v382_v54 }
  0x46   : > { %1534 = vmatprep.subr.mxu1 %v338_v55  ;;  %1476 = vmatmul.mubr.f32.gmra.mxu0 %v363_v56 }
  0x47   : > { %1535 = vmatpush3.msra.mxu1 %v338_v55  ;;  %1478 = vmatprep.mubr.f32.mxu0 %v364_v57 }
  0x48   : > { %1506 = vmatmul.mubr.f32.gmra.mxu1 %v383_v58  ;;  %1536 = vmatprep.subr.mxu1 %v337_v59 }
  0x49   : > { %1537 = vmatpush3.msra.mxu1 %v337_v59  ;;  %1540 = vmatprep.mubr.f32.mxu1 %v304_v60 }
  0x4a   : > { %1538 = vmatprep.subr.mxu1 %v336_v61  ;;  %1479 = vmatmul.mubr.f32.gmra.mxu0 %v365_v62 }
  0x4b   : > { %1539 = vmatpush3.msra.mxu1 %v336_v61  ;;  %1481 = vmatprep.mubr.f32.mxu0 %v366_v63 }
  0x4c   : > { %1541 = vmatmul.mubr.f32.vlgmr.msra.gmra.mxu1 %v305_v0  ;;  %1588 = vmatprep.subr.mxu0 %v936_v24 }
  0x4d   : > { %1543 = vmatprep.mubr.f32.mxu1 %v306_v1  ;;  %1589 = vmatpush3.msra.mxu0 %v936_v24 }
  0x4e   : > { %1482 = vmatmul.mubr.f32.gmra.mxu0 %v367_v2  ;;  %1590 = vmatprep.subr.mxu0 %v935_v26 }
  0x4f   : > { %1591 = vmatpush3.msra.mxu0 %v935_v26 }
  0x50   : > { %1544 = vmatmul.mubr.f32.gmra.mxu1 %v307_v3  ;;  %1592 = vmatprep.subr.mxu0 %v934_v28 }
  0x51   : > { %1546 = vmatprep.mubr.f32.mxu1 %v308_v4  ;;  %1593 = vmatpush3.msra.mxu0 %v934_v28 }
  0x52   : > { %1594 = vmatprep.subr.mxu0 %v933_v30 }
  0x53   : > { %1595 = vmatpush3.msra.mxu0 %v933_v30 }
  0x54   : > { %1547 = vmatmul.mubr.f32.gmra.mxu1 %v309_v5  ;;  %1596 = vmatprep.subr.mxu0 %v932_v32 }
  0x55   : > { %1549 = vmatprep.mubr.f32.mxu1 %v310_v6  ;;  %1597 = vmatpush3.msra.mxu0 %v932_v32 }
  0x56   : > { %1598 = vmatprep.subr.mxu0 %v931_v34 }
  0x57   : > { %1599 = vmatpush3.msra.mxu0 %v931_v34 }
  0x58   : > { %1550 = vmatmul.mubr.f32.gmra.mxu1 %v311_v7  ;;  %1600 = vmatprep.subr.mxu0 %v930_v36 }
  0x59   : > { %1552 = vmatprep.mubr.f32.mxu1 %v312_v8  ;;  %1601 = vmatpush3.msra.mxu0 %v930_v36 }
  0x5a   : > { %1602 = vmatprep.subr.mxu0 %v929_v38 }
  0x5b   : > { %1603 = vmatpush3.msra.mxu0 %v929_v38 }
  0x5c   : > { %1553 = vmatmul.mubr.f32.gmra.mxu1 %v313_v9  ;;  %1604 = vmatprep.subr.mxu0 %v928_v40 }
  0x5d   : > { %1555 = vmatprep.mubr.f32.mxu1 %v314_v10  ;;  %1605 = vmatpush3.msra.mxu0 %v928_v40  ;;  %v2021_v10 = vld [vmem:[%s2153_s4] ss:$0 sm:$0xff] }
  0x5e   : > { %1606 = vmatprep.subr.mxu0 %v927_v41 }
  0x5f   : > { %1607 = vmatpush3.msra.mxu0 %v927_v41 }
  0x60   : > { %1556 = vmatmul.mubr.f32.gmra.mxu1 %v315_v11  ;;  %1608 = vmatprep.subr.mxu0 %v926_v42 }
  0x61   : > { %1558 = vmatprep.mubr.f32.mxu1 %v316_v12  ;;  %1609 = vmatpush3.msra.mxu0 %v926_v42 }
  0x62   : > { %1610 = vmatprep.subr.mxu0 %v925_v43 }
  0x63   : > { %1611 = vmatpush3.msra.mxu0 %v925_v43 }
  0x64   : > { %1559 = vmatmul.mubr.f32.gmra.mxu1 %v317_v13  ;;  %1612 = vmatprep.subr.mxu0 %v924_v44 }
  0x65   : > { %1561 = vmatprep.mubr.f32.mxu1 %v318_v14  ;;  %1613 = vmatpush3.msra.mxu0 %v924_v44 }
  0x66   : > { %1614 = vmatprep.subr.mxu0 %v923_v45 }
  0x67   : > { %1615 = vmatpush3.msra.mxu0 %v923_v45 }
  0x68   : > { %1562 = vmatmul.mubr.f32.gmra.mxu1 %v319_v15  ;;  %1616 = vmatprep.subr.mxu0 %v922_v46 }
  0x69   : > { %1564 = vmatprep.mubr.f32.mxu1 %v320_v16  ;;  %1617 = vmatpush3.msra.mxu0 %v922_v46 }
  0x6a   : > { %1618 = vmatprep.subr.mxu0 %v921_v47 }
  0x6b   : > { %1619 = vmatpush3.msra.mxu0 %v921_v47 }
  0x6c   : > { %1565 = vmatmul.mubr.f32.gmra.mxu1 %v321_v17 }
  0x6d   : > { %1567 = vmatprep.mubr.f32.mxu1 %v322_v18 }
  0x70   : > { %1568 = vmatmul.mubr.f32.gmra.mxu1 %v323_v19 }
  0x71   : > { %1570 = vmatprep.mubr.f32.mxu1 %v324_v20 }
  0x74   : > { %1571 = vmatmul.mubr.f32.gmra.mxu1 %v325_v21 }
  0x75   : > { %1573 = vmatprep.mubr.f32.mxu1 %v326_v22 }
  0x78   : > { %1574 = vmatmul.mubr.f32.gmra.mxu1 %v327_v23 }
  0x79   : > { %1576 = vmatprep.mubr.f32.mxu1 %v328_v25 }
  0x7c   : > { %1577 = vmatmul.mubr.f32.gmra.mxu1 %v329_v27 }
  0x7d   : > { %1579 = vmatprep.mubr.f32.mxu1 %v330_v29 }
  0x80   : > { %1580 = vmatmul.mubr.f32.gmra.mxu1 %v331_v31 }
  0x81   : > { %1582 = vmatprep.mubr.f32.mxu1 %v332_v33 }
  0x84   : > { %1583 = vmatmul.mubr.f32.gmra.mxu1 %v333_v35 }
  0x85   : > { %1585 = vmatprep.mubr.f32.mxu1 %v334_v37 }
  0x88   : > { %1586 = vmatmul.mubr.f32.gmra.mxu1 %v335_v39 }
  0xec   : > { %v1986_v48 = vpop.f32.mrf.mxu1 }
  0xee   : > { %v1988_v49 = vpop.f32.mrf.mxu1 }
  0xf0   : > { %v1990_v50 = vpop.f32.mrf.mxu1 }
  0xf2   : > { %v1992_v51 = vpop.f32.mrf.mxu1  ;;  %v1462_v52 = vpop.f32.mrf.mxu0 }
  0xf4   : > { %v1994_v53 = vpop.f32.mrf.mxu1  ;;  %v466_v54 = vpop.f32.mrf.mxu0 }
  0xf6   : > { %v1996_v55 = vpop.f32.mrf.mxu1  ;;  %v1465_v56 = vpop.f32.mrf.mxu0 }
  0xf8   : > { %v1998_v57 = vpop.f32.mrf.mxu1  ;;  %v476_v59 = vpop.f32.mrf.mxu0 }
  0xfa   : > { %v2000_v58 = vpop.f32.mrf.mxu1  ;;  %v1468_v62 = vpop.f32.mrf.mxu0 }
  0xfc   : > { %v2002_v60 = vpop.f32.mrf.mxu1  ;;  %v486_v1 = vpop.f32.mrf.mxu0 }
  0xfe   : > { %v2004_v61 = vpop.f32.mrf.mxu1  ;;  %v1471_v4 = vpop.f32.mrf.mxu0 }
 0x100   : > { %v2006_v63 = vpop.f32.mrf.mxu1  ;;  %v496_v7 = vpop.f32.mrf.mxu0 }
 0x102   : > { %v2008_v0 = vpop.f32.mrf.mxu1  ;;  %v1474_v12 = vpop.f32.mrf.mxu0 }
 0x104   : > { %v2010_v2 = vpop.f32.mrf.mxu1  ;;  %v506_v19 = vpop.f32.mrf.mxu0 }
 0x106   : > { %v2012_v3 = vpop.f32.mrf.mxu1  ;;  %v1477_v28 = vpop.f32.mrf.mxu0 }
 0x108   : > { %v2014_v5 = vpop.f32.mrf.mxu1  ;;  %v516_v37 = vpop.f32.mrf.mxu0 }
 0x10a   : > { %v2016_v6 = vpop.f32.mrf.mxu1  ;;  %v1480_v46 = vpop.f32.mrf.mxu0 }
 0x10c   : > { %v1542_v8 = vpop.f32.mrf.mxu1 }
 0x10d   : > { %v697_v9 = vadd.f32 %v1542_v8, %v1462_v52 }
 0x10e   : > { %v691_v11 = vpop.f32.mrf.mxu1 }
 0x10f   : > { %v692_v13 = vadd.f32 %v691_v11, %v466_v54  ;;  %v858_v14 = vadd.f32 %v2021_v10, %v697_v9 }
 0x110   : > { %v1545_v15 = vpop.f32.mrf.mxu1 }
 0x111   : > { %v857_v16 = vadd.f32 %v2021_v10, %v692_v13  ;;  %v707_v17 = vadd.f32 %v1545_v15, %v1465_v56  ;;  %v890_v22 = vmax.f32 %v858_v14, 0.0 }
 0x112   : > { %v701_v18 = vpop.f32.mrf.mxu1 }
 0x113   : > { %v889_v20 = vmax.f32 %v857_v16, 0.0  ;;  %v702_v21 = vadd.f32 %v701_v18, %v476_v59  ;;  %v860_v23 = vadd.f32 %v2021_v10, %v707_v17 }
 0x114   : > { %v1548_v24 = vpop.f32.mrf.mxu1 }
 0x115   : > { %v859_v25 = vadd.f32 %v2021_v10, %v702_v21  ;;  %v717_v26 = vadd.f32 %v1548_v24, %v1468_v62  ;;  %1620 = vmatprep.mubr.f32.mxu0 %v889_v20  ;;  %v892_v31 = vmax.f32 %v860_v23, 0.0 }
 0x116   : > { %v711_v27 = vpop.f32.mrf.mxu1  ;;  %1621 = vmatmul.mubr.f32.vlgmr.msra.gmra.mxu0 %v890_v22 }
 0x117   : > { %v891_v29 = vmax.f32 %v859_v25, 0.0  ;;  %v712_v30 = vadd.f32 %v711_v27, %v486_v1  ;;  %v862_v32 = vadd.f32 %v2021_v10, %v717_v26 }
 0x118   : > { %v1551_v33 = vpop.f32.mrf.mxu1 }
 0x119   : > { %v861_v34 = vadd.f32 %v2021_v10, %v712_v30  ;;  %v727_v35 = vadd.f32 %v1551_v33, %v1471_v4  ;;  %1623 = vmatprep.mubr.f32.mxu0 %v891_v29  ;;  %v894_v40 = vmax.f32 %v862_v32, 0.0 }
 0x11a   : > { %v721_v36 = vpop.f32.mrf.mxu1  ;;  %1624 = vmatmul.mubr.f32.gmra.mxu0 %v892_v31 }
 0x11b   : > { %v893_v38 = vmax.f32 %v861_v34, 0.0  ;;  %v722_v39 = vadd.f32 %v721_v36, %v496_v7  ;;  %v864_v41 = vadd.f32 %v2021_v10, %v727_v35  ;;  %v526_v7 = vpop.f32.mrf.mxu0 }
 0x11c   : > { %v1554_v42 = vpop.f32.mrf.mxu1 }
 0x11d   : > { %v863_v43 = vadd.f32 %v2021_v10, %v722_v39  ;;  %v737_v44 = vadd.f32 %v1554_v42, %v1474_v12  ;;  %1626 = vmatprep.mubr.f32.mxu0 %v893_v38  ;;  %v896_v54 = vmax.f32 %v864_v41, 0.0  ;;  %v1483_v17 = vpop.f32.mrf.mxu0 }
 0x11e   : > { %v731_v45 = vpop.f32.mrf.mxu1  ;;  %1627 = vmatmul.mubr.f32.gmra.mxu0 %v894_v40 }
 0x11f   : > { %v895_v47 = vmax.f32 %v863_v43, 0.0  ;;  %v732_v52 = vadd.f32 %v731_v45, %v506_v19  ;;  %v866_v56 = vadd.f32 %v2021_v10, %v737_v44  ;;  %v536_v25 = vpop.f32.mrf.mxu0 }
 0x120   : > { %v1557_v59 = vpop.f32.mrf.mxu1 }
 0x121   : > { %v865_v62 = vadd.f32 %v2021_v10, %v732_v52  ;;  %v747_v1 = vadd.f32 %v1557_v59, %v1477_v28  ;;  %1629 = vmatprep.mubr.f32.mxu0 %v895_v47  ;;  %v898_v11 = vmax.f32 %v866_v56, 0.0 }
 0x122   : > { %v741_v4 = vpop.f32.mrf.mxu1  ;;  %1630 = vmatmul.mubr.f32.gmra.mxu0 %v896_v54 }
 0x123   : > { %v897_v8 = vmax.f32 %v865_v62, 0.0  ;;  %v742_v9 = vadd.f32 %v741_v4, %v516_v37  ;;  %v868_v12 = vadd.f32 %v2021_v10, %v747_v1 }
 0x124   : > { %v1560_v13 = vpop.f32.mrf.mxu1 }
 0x125   : > { %v867_v14 = vadd.f32 %v2021_v10, %v742_v9  ;;  %v757_v15 = vadd.f32 %v1560_v13, %v1480_v46  ;;  %1632 = vmatprep.mubr.f32.mxu0 %v897_v8  ;;  %v900_v20 = vmax.f32 %v868_v12, 0.0 }
 0x126   : > { %v751_v16 = vpop.f32.mrf.mxu1  ;;  %1633 = vmatmul.mubr.f32.gmra.mxu0 %v898_v11 }
 0x127   : > { %v899_v18 = vmax.f32 %v867_v14, 0.0  ;;  %v752_v19 = vadd.f32 %v751_v16, %v526_v7  ;;  %v870_v21 = vadd.f32 %v2021_v10, %v757_v15 }
 0x128   : > { %v1563_v22 = vpop.f32.mrf.mxu1 }
 0x129   : > { %v869_v23 = vadd.f32 %v2021_v10, %v752_v19  ;;  %v767_v24 = vadd.f32 %v1563_v22, %v1483_v17  ;;  %1635 = vmatprep.mubr.f32.mxu0 %v899_v18  ;;  %v902_v29 = vmax.f32 %v870_v21, 0.0 }
 0x12a   : > { %v761_v26 = vpop.f32.mrf.mxu1  ;;  %1636 = vmatmul.mubr.f32.gmra.mxu0 %v900_v20 }
 0x12b   : > { %v901_v27 = vmax.f32 %v869_v23, 0.0  ;;  %v762_v28 = vadd.f32 %v761_v26, %v536_v25  ;;  %v872_v30 = vadd.f32 %v2021_v10, %v767_v24 }
 0x12c   : > { %v1566_v31 = vpop.f32.mrf.mxu1 }
 0x12d   : > { %v871_v32 = vadd.f32 %v2021_v10, %v762_v28  ;;  %v777_v33 = vadd.f32 %v1566_v31, %v1986_v48  ;;  %1638 = vmatprep.mubr.f32.mxu0 %v901_v27  ;;  %v904_v37 = vmax.f32 %v872_v30, 0.0 }
 0x12e   : > { %v771_v34 = vpop.f32.mrf.mxu1  ;;  %1639 = vmatmul.mubr.f32.gmra.mxu0 %v902_v29 }
 0x12f   : > { %v903_v35 = vmax.f32 %v871_v32, 0.0  ;;  %v772_v36 = vadd.f32 %v771_v34, %v1988_v49  ;;  %v874_v38 = vadd.f32 %v2021_v10, %v777_v33 }
 0x130   : > { %v1569_v39 = vpop.f32.mrf.mxu1 }
 0x131   : > { %v873_v40 = vadd.f32 %v2021_v10, %v772_v36  ;;  %v787_v41 = vadd.f32 %v1569_v39, %v1990_v50  ;;  %1641 = vmatprep.mubr.f32.mxu0 %v903_v35  ;;  %v906_v44 = vmax.f32 %v874_v38, 0.0 }
 0x132   : > { %v781_v42 = vpop.f32.mrf.mxu1  ;;  %1642 = vmatmul.mubr.f32.gmra.mxu0 %v904_v37 }
 0x133   : > { %v905_v43 = vmax.f32 %v873_v40, 0.0  ;;  %v782_v48 = vadd.f32 %v781_v42, %v1992_v51  ;;  %v876_v45 = vadd.f32 %v2021_v10, %v787_v41 }
 0x134   : > { %v1572_v46 = vpop.f32.mrf.mxu1 }
 0x135   : > { %v875_v49 = vadd.f32 %v2021_v10, %v782_v48  ;;  %v797_v47 = vadd.f32 %v1572_v46, %v1994_v53  ;;  %1644 = vmatprep.mubr.f32.mxu0 %v905_v43  ;;  %v908_v56 = vmax.f32 %v876_v45, 0.0 }
 0x136   : > { %v791_v52 = vpop.f32.mrf.mxu1  ;;  %1645 = vmatmul.mubr.f32.gmra.mxu0 %v906_v44 }
 0x137   : > { %v907_v54 = vmax.f32 %v875_v49, 0.0  ;;  %v792_v50 = vadd.f32 %v791_v52, %v1996_v55  ;;  %v878_v59 = vadd.f32 %v2021_v10, %v797_v47 }
 0x138   : > { %v1575_v62 = vpop.f32.mrf.mxu1 }
 0x139   : > { %v877_v51 = vadd.f32 %v2021_v10, %v792_v50  ;;  %v807_v1 = vadd.f32 %v1575_v62, %v1998_v57  ;;  %1647 = vmatprep.mubr.f32.mxu0 %v907_v54  ;;  %v910_v8 = vmax.f32 %v878_v59, 0.0 }
 0x13a   : > { %v801_v4 = vpop.f32.mrf.mxu1  ;;  %1648 = vmatmul.mubr.f32.gmra.mxu0 %v908_v56 }
 0x13b   : > { %v909_v7 = vmax.f32 %v877_v51, 0.0  ;;  %v802_v53 = vadd.f32 %v801_v4, %v2000_v58  ;;  %v880_v9 = vadd.f32 %v2021_v10, %v807_v1 }
 0x13c   : > { %v1578_v11 = vpop.f32.mrf.mxu1 }
 0x13d   : > { %v879_v55 = vadd.f32 %v2021_v10, %v802_v53  ;;  %v817_v12 = vadd.f32 %v1578_v11, %v2002_v60  ;;  %1650 = vmatprep.mubr.f32.mxu0 %v909_v7  ;;  %v912_v15 = vmax.f32 %v880_v9, 0.0 }
 0x13e   : > { %v811_v13 = vpop.f32.mrf.mxu1  ;;  %1651 = vmatmul.mubr.f32.gmra.mxu0 %v910_v8 }
 0x13f   : > { %v911_v14 = vmax.f32 %v879_v55, 0.0  ;;  %v812_v57 = vadd.f32 %v811_v13, %v2004_v61  ;;  %v882_v16 = vadd.f32 %v2021_v10, %v817_v12 }
 0x140   : > { %v1581_v17 = vpop.f32.mrf.mxu1 }
 0x141   : > { %v881_v58 = vadd.f32 %v2021_v10, %v812_v57  ;;  %v827_v18 = vadd.f32 %v1581_v17, %v2006_v63  ;;  %1653 = vmatprep.mubr.f32.mxu0 %v911_v14  ;;  %v914_v21 = vmax.f32 %v882_v16, 0.0 }
 0x142   : > { %v821_v19 = vpop.f32.mrf.mxu1  ;;  %1654 = vmatmul.mubr.f32.gmra.mxu0 %v912_v15 }
 0x143   : > { %v913_v20 = vmax.f32 %v881_v58, 0.0  ;;  %v822_v60 = vadd.f32 %v821_v19, %v2008_v0  ;;  %v884_v22 = vadd.f32 %v2021_v10, %v827_v18 }
 0x144   : > { %v1584_v23 = vpop.f32.mrf.mxu1 }
 0x145   : > { %v883_v61 = vadd.f32 %v2021_v10, %v822_v60  ;;  %v837_v24 = vadd.f32 %v1584_v23, %v2010_v2  ;;  %1656 = vmatprep.mubr.f32.mxu0 %v913_v20  ;;  %v916_v27 = vmax.f32 %v884_v22, 0.0 }
 0x146   : > { %v831_v25 = vpop.f32.mrf.mxu1  ;;  %1657 = vmatmul.mubr.f32.gmra.mxu0 %v914_v21 }
 0x147   : > { %v915_v26 = vmax.f32 %v883_v61, 0.0  ;;  %v832_v63 = vadd.f32 %v831_v25, %v2012_v3  ;;  %v886_v28 = vadd.f32 %v2021_v10, %v837_v24 }
 0x148   : > { %v1587_v29 = vpop.f32.mrf.mxu1 }
 0x149   : > { %v885_v0 = vadd.f32 %v2021_v10, %v832_v63  ;;  %v847_v30 = vadd.f32 %v1587_v29, %v2014_v5  ;;  %1659 = vmatprep.mubr.f32.mxu0 %v915_v26  ;;  %v918_v33 = vmax.f32 %v886_v28, 0.0  ;;  %v2074_v5 = vld [vmem:[%s2155_s6] ss:$0 sm:$0xff] }
 0x14a   : > { %v841_v31 = vpop.f32.mrf.mxu1  ;;  %1660 = vmatmul.mubr.f32.gmra.mxu0 %v916_v27 }
 0x14b   : > { %v917_v32 = vmax.f32 %v885_v0, 0.0  ;;  %v842_v2 = vadd.f32 %v841_v31, %v2016_v6  ;;  %v888_v34 = vadd.f32 %v2021_v10, %v847_v30 }
 0x14d   : > { %v887_v3 = vadd.f32 %v2021_v10, %v842_v2  ;;  %1662 = vmatprep.mubr.f32.mxu0 %v917_v32  ;;  %v920_v36 = vmax.f32 %v888_v34, 0.0 }
 0x14e   : > { %1663 = vmatmul.mubr.f32.gmra.mxu0 %v918_v33 }
 0x14f   : > { %v919_v35 = vmax.f32 %v887_v3, 0.0 }
 0x151   : > { %1665 = vmatprep.mubr.f32.mxu0 %v919_v35 }
 0x152   : > { %1666 = vmatmul.mubr.f32.gmra.mxu0 %v920_v36 }
 0x1d6   : > { %v1622_v6 = vpop.f32.mrf.mxu0 }
 0x1d7   : > { %v1016_v10 = vadd.f32 %v1622_v6, %v2074_v5 }
 0x1d8   : > { %v1010_v37 = vpop.f32.mrf.mxu0 }
 0x1d9   : > { %1170 = vst [vmem:[%s2080_s10 + $0x8] sm:$0xff] %v1016_v10  ;;  %v1011_v38 = vadd.f32 %v2074_v5, %v1010_v37 }
 0x1da   : > { %v1625_v39 = vpop.f32.mrf.mxu0 }
 0x1db   : > { %1169 = vst [vmem:[%s2080_s10] sm:$0xff] %v1011_v38  ;;  %v1026_v40 = vadd.f32 %v1625_v39, %v2074_v5 }
 0x1dc   : > { %v1020_v41 = vpop.f32.mrf.mxu0 }
 0x1dd   : > { %1172 = vst [vmem:[%s2080_s10 + $0x18] sm:$0xff] %v1026_v40  ;;  %v1021_v42 = vadd.f32 %v2074_v5, %v1020_v41 }
 0x1de   : > { %v1628_v43 = vpop.f32.mrf.mxu0 }
 0x1df   : > { %1171 = vst [vmem:[%s2080_s10 + $0x10] sm:$0xff] %v1021_v42  ;;  %v1036_v48 = vadd.f32 %v1628_v43, %v2074_v5 }
 0x1e0   : > { %v1030_v44 = vpop.f32.mrf.mxu0 }
 0x1e1   : > { %1174 = vst [vmem:[%s2080_s10 + $0x28] sm:$0xff] %v1036_v48  ;;  %v1031_v45 = vadd.f32 %v2074_v5, %v1030_v44 }
 0x1e2   : > { %v1631_v46 = vpop.f32.mrf.mxu0 }
 0x1e3   : > { %1173 = vst [vmem:[%s2080_s10 + $0x20] sm:$0xff] %v1031_v45  ;;  %v1046_v49 = vadd.f32 %v1631_v46, %v2074_v5 }
 0x1e4   : > { %v1040_v47 = vpop.f32.mrf.mxu0 }
 0x1e5   : > { %1176 = vst [vmem:[%s2080_s10 + $0x38] sm:$0xff] %v1046_v49  ;;  %v1041_v52 = vadd.f32 %v2074_v5, %v1040_v47 }
 0x1e6   : > { %v1634_v54 = vpop.f32.mrf.mxu0 }
 0x1e7   : > { %1175 = vst [vmem:[%s2080_s10 + $0x30] sm:$0xff] %v1041_v52  ;;  %v1056_v50 = vadd.f32 %v1634_v54, %v2074_v5 }
 0x1e8   : > { %v1050_v56 = vpop.f32.mrf.mxu0 }
 0x1e9   : > { %1178 = vst [vmem:[%s2080_s10 + $0x48] sm:$0xff] %v1056_v50  ;;  %v1051_v59 = vadd.f32 %v2074_v5, %v1050_v56 }
 0x1ea   : > { %v1637_v62 = vpop.f32.mrf.mxu0 }
 0x1eb   : > { %1177 = vst [vmem:[%s2080_s10 + $0x40] sm:$0xff] %v1051_v59  ;;  %v1066_v51 = vadd.f32 %v1637_v62, %v2074_v5 }
 0x1ec   : > { %v1060_v1 = vpop.f32.mrf.mxu0 }
 0x1ed   : > { %1180 = vst [vmem:[%s2080_s10 + $0x58] sm:$0xff] %v1066_v51  ;;  %v1061_v4 = vadd.f32 %v2074_v5, %v1060_v1 }
 0x1ee   : > { %v1640_v7 = vpop.f32.mrf.mxu0 }
 0x1ef   : > { %1179 = vst [vmem:[%s2080_s10 + $0x50] sm:$0xff] %v1061_v4  ;;  %v1076_v53 = vadd.f32 %v1640_v7, %v2074_v5 }
 0x1f0   : > { %v1070_v8 = vpop.f32.mrf.mxu0 }
 0x1f1   : > { %1182 = vst [vmem:[%s2080_s10 + $0x68] sm:$0xff] %v1076_v53  ;;  %v1071_v9 = vadd.f32 %v2074_v5, %v1070_v8 }
 0x1f2   : > { %v1643_v11 = vpop.f32.mrf.mxu0 }
 0x1f3   : > { %1181 = vst [vmem:[%s2080_s10 + $0x60] sm:$0xff] %v1071_v9  ;;  %v1086_v55 = vadd.f32 %v1643_v11, %v2074_v5 }
 0x1f4   : > { %v1080_v12 = vpop.f32.mrf.mxu0 }
 0x1f5   : > { %1184 = vst [vmem:[%s2080_s10 + $0x78] sm:$0xff] %v1086_v55  ;;  %v1081_v13 = vadd.f32 %v2074_v5, %v1080_v12 }
 0x1f6   : > { %v1646_v14 = vpop.f32.mrf.mxu0 }
 0x1f7   : > { %1183 = vst [vmem:[%s2080_s10 + $0x70] sm:$0xff] %v1081_v13  ;;  %v1096_v57 = vadd.f32 %v1646_v14, %v2074_v5 }
 0x1f8   : > { %v1090_v15 = vpop.f32.mrf.mxu0 }
 0x1f9   : > { %1186 = vst [vmem:[%s2080_s10 + $0x88] sm:$0xff] %v1096_v57  ;;  %v1091_v16 = vadd.f32 %v2074_v5, %v1090_v15 }
 0x1fa   : > { %v1649_v17 = vpop.f32.mrf.mxu0 }
 0x1fb   : > { %1185 = vst [vmem:[%s2080_s10 + $0x80] sm:$0xff] %v1091_v16  ;;  %v1106_v58 = vadd.f32 %v1649_v17, %v2074_v5 }
 0x1fc   : > { %v1100_v18 = vpop.f32.mrf.mxu0 }
 0x1fd   : > { %1188 = vst [vmem:[%s2080_s10 + $0x98] sm:$0xff] %v1106_v58  ;;  %v1101_v19 = vadd.f32 %v2074_v5, %v1100_v18 }
 0x1fe   : > { %v1652_v20 = vpop.f32.mrf.mxu0 }
 0x1ff   : > { %1187 = vst [vmem:[%s2080_s10 + $0x90] sm:$0xff] %v1101_v19  ;;  %v1116_v60 = vadd.f32 %v1652_v20, %v2074_v5 }
 0x200   : > { %v1110_v21 = vpop.f32.mrf.mxu0 }
 0x201   : > { %1190 = vst [vmem:[%s2080_s10 + $0xa8] sm:$0xff] %v1116_v60  ;;  %v1111_v22 = vadd.f32 %v2074_v5, %v1110_v21 }
 0x202   : > { %v1655_v23 = vpop.f32.mrf.mxu0 }
 0x203   : > { %1189 = vst [vmem:[%s2080_s10 + $0xa0] sm:$0xff] %v1111_v22  ;;  %v1126_v61 = vadd.f32 %v1655_v23, %v2074_v5 }
 0x204   : > { %v1120_v24 = vpop.f32.mrf.mxu0 }
 0x205   : > { %1192 = vst [vmem:[%s2080_s10 + $0xb8] sm:$0xff] %v1126_v61  ;;  %v1121_v25 = vadd.f32 %v2074_v5, %v1120_v24 }
 0x206   : > { %v1658_v26 = vpop.f32.mrf.mxu0 }
 0x207   : > { %1191 = vst [vmem:[%s2080_s10 + $0xb0] sm:$0xff] %v1121_v25  ;;  %v1136_v63 = vadd.f32 %v1658_v26, %v2074_v5 }
 0x208   : > { %v1130_v27 = vpop.f32.mrf.mxu0 }
 0x209   : > { %1194 = vst [vmem:[%s2080_s10 + $0xc8] sm:$0xff] %v1136_v63  ;;  %v1131_v28 = vadd.f32 %v2074_v5, %v1130_v27 }
 0x20a   : > { %v1661_v29 = vpop.f32.mrf.mxu0 }
 0x20b   : > { %1193 = vst [vmem:[%s2080_s10 + $0xc0] sm:$0xff] %v1131_v28  ;;  %v1146_v0 = vadd.f32 %v1661_v29, %v2074_v5 }
 0x20c   : > { %v1140_v30 = vpop.f32.mrf.mxu0 }
 0x20d   : > { %1196 = vst [vmem:[%s2080_s10 + $0xd8] sm:$0xff] %v1146_v0  ;;  %v1141_v31 = vadd.f32 %v2074_v5, %v1140_v30 }
 0x20e   : > { %v1664_v32 = vpop.f32.mrf.mxu0 }
 0x20f   : > { %1195 = vst [vmem:[%s2080_s10 + $0xd0] sm:$0xff] %v1141_v31  ;;  %v1156_v2 = vadd.f32 %v1664_v32, %v2074_v5 }
 0x210   : > { %v1150_v33 = vpop.f32.mrf.mxu0 }
 0x211   : > { %1198 = vst [vmem:[%s2080_s10 + $0xe8] sm:$0xff] %v1156_v2  ;;  %v1151_v34 = vadd.f32 %v2074_v5, %v1150_v33 }
 0x212   : > { %v1667_v3 = vpop.f32.mrf.mxu0 }
 0x213   : > { %1197 = vst [vmem:[%s2080_s10 + $0xe0] sm:$0xff] %v1151_v34  ;;  %v1166_v35 = vadd.f32 %v1667_v3, %v2074_v5 }
 0x214   : > { %v1160_v36 = vpop.f32.mrf.mxu0 }
 0x215   : > { %1200 = vst [vmem:[%s2080_s10 + $0xf8] sm:$0xff] %v1166_v35  ;;  %v1161_v6 = vadd.f32 %v2074_v5, %v1160_v36 }
 0x217   : > { %1199 = vst [vmem:[%s2080_s10 + $0xf0] sm:$0xff] %v1161_v6 }
 0x218 PF: > { %s17_s24 = sadd.s32 1, %s1714_s24  }
 0x219   : > { %p14_p4 = scmp.ge.s32.totalorder %s17_s24, 4  }
 0x21b   :  { %16 = sbr.rel (!%p14_p4) target bundleno = 1 (0x1), region = 81 }

</bundles_post_ra>
